<compile_context>
chip_gen: v7x
topology: tpu7x:2x2x1
jax: 0.10.0
libtpu: 0.0.40
codegen_flags: <defaults>
</compile_context>

<pallas_src>
import functools

import jax
import jax.numpy as jnp
import numpy as np
from jax.experimental import pallas as pl
from jax.experimental.pallas import tpu as pltpu


_VMEM_TILE_BUDGET = 40 << 20   # conservative tile budget (under v7x 64 MiB physical)
_VMEM_LIMIT_BYTES = 48 << 20   # explicit scoped VMEM (> v5e 16 MiB default, < v7x 64 MiB)


def _round_up(a, b):
    return (a + b - 1) // b * b


def _vmem_tile_bytes(tm, c, i, in_bytes, w_bytes, out_bytes):
    """Rough VMEM footprint of one pipeline configuration."""
    # x, y, z blocks are double-buffered by the pipeline; uv/wg/bg use Buffered(1).
    stream = 2 * 2 * tm * c * in_bytes + 2 * tm * max(i, 128) * out_bytes
    weights = 2 * max(c, 128) * 4 + c * max(i, 128) * w_bytes + max(i, 128) * 4
    return stream + weights


def _relation_kernel(c0_ref,             # SMEM (1,)   : bt.wct + bp.wcp
                     x_ref, y_ref,       # [TM, C]     (compute dtype)
                     uv_ref,             # [2, C] f32  : row0 = u, row1 = v
                     wg_ref,             # [C, I]      : gamma * Wg (compute dtype)
                     bg_ref,             # [1, I] f32  : gamma * bg
                     z_ref):             # [TM, I]
    x = x_ref[...]
    y = y_ref[...]

    # f = ReLU(theta_x @ wct.T + phi_y @ wcp.T) == ReLU(x@u + y@v + c0).
    # Single fused cross-lane reduce (one XLU reduce instead of two); the
    # elementwise path stays in f32 even when x/y arrive as bf16.
    u = uv_ref[0:1, :]                                   # [1, C]
    v = uv_ref[1:2, :]                                   # [1, C]
    xy = x.astype(jnp.float32) * u + y.astype(jnp.float32) * v
    s = jnp.sum(xy, axis=-1, keepdims=True) + c0_ref[0]  # [TM, 1]
    f = jnp.maximum(s, 0.0)

    # gamma * g_y  (gamma already folded into wg/bg by the wrapper); f32 accumulate.
    g_y = jnp.dot(y, wg_ref[...], preferred_element_type=jnp.float32) + bg_ref[...]

    z_ref[...] = (f * g_y).astype(z_ref.dtype)


@functools.partial(jax.jit, static_argnames=("tm", "compute_dtype", "out_dtype"))
def relation_between_pair(x, y, params, tm=512,
                          compute_dtype=jnp.float32, out_dtype=jnp.float32):
    """x, y: [N, in_channels]. Returns z: [N, inter_channels] in out_dtype."""
    n, c = x.shape
    i = params["wg"].shape[1]

    in_bytes = jnp.dtype(compute_dtype).itemsize
    out_bytes = jnp.dtype(out_dtype).itemsize

    # --- wrapper-side precompute (tiny XLA ops) ---
    gamma = params["gamma"][0]
    u = params["wt"] @ params["wct"].T                          # [C, 1]
    v = params["wp"] @ params["wcp"].T                          # [C, 1]
    uv = jnp.concatenate([u.T, v.T], axis=0).astype(jnp.float32)  # [2, C]
    c0 = (jnp.sum(params["bt"] * params["wct"])
          + jnp.sum(params["bp"] * params["wcp"])).reshape((1,)).astype(jnp.float32)
    wg_s = (gamma * params["wg"]).astype(compute_dtype)         # [C, I]
    bg_s = (gamma * params["bg"]).astype(jnp.float32)           # [1, I]
    x_c = x.astype(compute_dtype)
    y_c = y.astype(compute_dtype)

    # --- tiling: largest row tile that fits a conservative, cross-chip VMEM budget ---
    tm_eff = max(8, min(_round_up(tm, 8), _round_up(n, 8)))
    while (tm_eff > 8 and
           _vmem_tile_bytes(tm_eff, c, i, in_bytes, in_bytes, out_bytes)
           > _VMEM_TILE_BUDGET):
        tm_eff = max(8, _round_up(tm_eff // 2, 8))
    grid = (pl.cdiv(n, tm_eff),)
    # NOTE: a partial last block computes f/g_y on undefined padded rows; those
    # rows are never committed to HBM and nothing reduces across rows, so the
    # result is unaffected.

    row_in = pl.BlockSpec((tm_eff, c), lambda r: (r, 0))
    # Un-padded output: block last dim == full array dim is legal; avoids the
    # 16x padded-write + wrapper-slice penalty when inter << 128.
    row_out = pl.BlockSpec((tm_eff, i), lambda r: (r, 0))
    # Grid-invariant operands: constant index_map + single buffer.
    uv_spec = pl.BlockSpec((2, c), lambda r: (0, 0), pipeline_mode=pl.Buffered(1))
    w_spec = pl.BlockSpec((c, i), lambda r: (0, 0), pipeline_mode=pl.Buffered(1))
    b_spec = pl.BlockSpec((1, i), lambda r: (0, 0), pipeline_mode=pl.Buffered(1))

    flops = 2 * n * c * i + 4 * n * c + 3 * n * i
    bytes_accessed = (in_bytes * (2 * n * c + c * i)
                      + 4 * (2 * c + i + 1)
                      + out_bytes * n * i)

    z = pl.pallas_call(
        _relation_kernel,
        out_shape=jax.ShapeDtypeStruct((n, i), out_dtype),
        grid_spec=pltpu.PrefetchScalarGridSpec(
            num_scalar_prefetch=0,
            grid=grid,
            in_specs=[
                pl.BlockSpec(memory_space=pltpu.SMEM),   # c0 (1,)
                row_in, row_in,                          # x, y
                uv_spec,                                 # packed u / v
                w_spec, b_spec,                          # gamma*Wg, gamma*bg
            ],
            out_specs=row_out,
        ),
        compiler_params=pltpu.CompilerParams(
            dimension_semantics=("parallel",),
            vmem_limit_bytes=_VMEM_LIMIT_BYTES),
        cost_estimate=pl.CostEstimate(
            flops=flops, transcendentals=0, bytes_accessed=bytes_accessed),
    )(c0, x_c, y_c, uv, wg_s, bg_s)

    return z


def init_params(key, in_channels, unit_nums, gamma_value=0.0):
    inter = in_channels // unit_nums
    if inter == 0:
        inter = 1
    kg, kt, kp, kc = jax.random.split(key, 4)
    # PyTorch Linear weight is [out, in]; we store the transpose [in, out].
    wg = (0.01 * jax.random.normal(kg, (inter, in_channels), jnp.float32)).T
    wt = (0.01 * jax.random.normal(kt, (inter, in_channels), jnp.float32)).T
    wp = (0.01 * jax.random.normal(kp, (inter, in_channels), jnp.float32)).T
    wcp_full = 0.01 * jax.random.normal(kc, (1, 2 * inter), jnp.float32)  # [1, 2I]
    return {
        "wg": wg, "bg": jnp.zeros((1, inter), jnp.float32),
        "wt": wt, "bt": jnp.zeros((1, inter), jnp.float32),
        "wp": wp, "bp": jnp.zeros((1, inter), jnp.float32),
        "wct": wcp_full[:, :inter],          # theta-half of concat_project weight
        "wcp": wcp_full[:, inter:],          # phi-half
        "gamma": jnp.full((1,), gamma_value, jnp.float32),   # nn.Parameter(zeros(1))
    }


def reference(x, y, p):
    """Unfused reference matching the PyTorch forward exactly."""
    theta_x = x @ p["wt"] + p["bt"]
    phi_y = y @ p["wp"] + p["bp"]
    g_y = y @ p["wg"] + p["bg"]
    concat = jnp.concatenate([theta_x, phi_y], axis=1)
    wcp_full = jnp.concatenate([p["wct"], p["wcp"]], axis=1)   # [1, 2I]
    f = jnp.maximum(concat @ wcp_full.T, 0.0)                  # [N, 1]
    return p["gamma"][0] * f * g_y


if __name__ == "__main__":
    key = jax.random.PRNGKey(0)
    kx, ky, kp = jax.random.split(key, 3)

    N, IN_CHANNELS, UNIT_NUMS = 64, 32, 4      # inter_channels = 8
    x = jax.random.normal(kx, (N, IN_CHANNELS), jnp.float32)
    y = jax.random.normal(ky, (N, IN_CHANNELS), jnp.float32)

    # Faithful init: gamma = 0 (module initializes nn.Parameter(torch.zeros(1))).
    params = init_params(kp, IN_CHANNELS, UNIT_NUMS, gamma_value=0.0)
    z = relation_between_pair(x, y, params)
    jax.block_until_ready(z)
    assert z.shape == (N, IN_CHANNELS // UNIT_NUMS)
    assert np.allclose(np.asarray(z), np.asarray(reference(x, y, params)),
                       rtol=1e-5, atol=1e-5)

    # Non-trivial gamma and non-zero biases so the full compute path is exercised.
    params_nz = dict(params,
                     gamma=jnp.full((1,), 0.7, jnp.float32),
                     bt=jnp.full((1, IN_CHANNELS // UNIT_NUMS), 0.03, jnp.float32),
                     bp=jnp.full((1, IN_CHANNELS // UNIT_NUMS), -0.02, jnp.float32),
                     bg=jnp.full((1, IN_CHANNELS // UNIT_NUMS), 0.05, jnp.float32))
    z_nz = relation_between_pair(x, y, params_nz)
    jax.block_until_ready(z_nz)
    assert np.allclose(np.asarray(z_nz), np.asarray(reference(x, y, params_nz)),
                       rtol=1e-5, atol=1e-5)

    # Optional bf16 fast path (halves HBM traffic on x/y/z; f32 accumulate kept).
    z_bf = relation_between_pair(x, y, params_nz,
                                 compute_dtype=jnp.bfloat16, out_dtype=jnp.bfloat16)
    jax.block_until_ready(z_bf)
    assert z_bf.dtype == jnp.bfloat16
    assert np.allclose(np.asarray(z_bf).astype(np.float32),
                       np.asarray(reference(x, y, params_nz)),
                       rtol=5e-2, atol=1e-4)

    print("KERNEL_OK")
</pallas_src>

<mosaic_0001>
module attributes {stable_mosaic.version = 11 : i64} {
  func.func @_relation_kernel(%arg0: i32, %arg1: memref<1xf32, #tpu.memory_space<smem>>, %arg2: memref<64x32xf32, #tpu.memory_space<vmem>>, %arg3: memref<64x32xf32, #tpu.memory_space<vmem>>, %arg4: memref<2x32xf32, #tpu.memory_space<vmem>>, %arg5: memref<32x8xf32, #tpu.memory_space<vmem>>, %arg6: memref<1x8xf32, #tpu.memory_space<vmem>>, %arg7: memref<64x8xf32, #tpu.memory_space<vmem>>) attributes {dimension_semantics = [#tpu.dimension_semantics<parallel>], iteration_bounds = array<i64: 1>, scalar_prefetch = 0 : i64, scratch_operands = 0 : i64, tpu.core_type = #tpu.core_type<tc>, window_params = [{transform_indices = @transform_0, window_bounds = array<i64: 1>}, {transform_indices = @transform_1, window_bounds = array<i64: 64, 32>}, {transform_indices = @transform_2, window_bounds = array<i64: 64, 32>}, {pipeline_mode = #tpu.pipeline_mode<synchronous>, transform_indices = @transform_3, window_bounds = array<i64: 2, 32>}, {pipeline_mode = #tpu.pipeline_mode<synchronous>, transform_indices = @transform_4, window_bounds = array<i64: 32, 8>}, {pipeline_mode = #tpu.pipeline_mode<synchronous>, transform_indices = @transform_5, window_bounds = array<i64: 1, 8>}, {transform_indices = @transform_6, window_bounds = array<i64: 64, 8>}]} {
    %c0 = arith.constant 0 : index
    %c0_0 = arith.constant 0 : index
    %0 = vector.load %arg2[%c0, %c0_0] : memref<64x32xf32, #tpu.memory_space<vmem>>, vector<64x32xf32>
    %c0_1 = arith.constant 0 : index
    %c0_2 = arith.constant 0 : index
    %1 = vector.load %arg3[%c0_1, %c0_2] : memref<64x32xf32, #tpu.memory_space<vmem>>, vector<64x32xf32>
    %c0_3 = arith.constant 0 : index
    %c0_4 = arith.constant 0 : index
    %2 = vector.load %arg4[%c0_3, %c0_4] : memref<2x32xf32, #tpu.memory_space<vmem>>, vector<1x32xf32>
    %c1 = arith.constant 1 : index
    %c0_5 = arith.constant 0 : index
    %3 = vector.load %arg4[%c1, %c0_5] : memref<2x32xf32, #tpu.memory_space<vmem>>, vector<1x32xf32>
    %4 = vector.broadcast %2 : vector<1x32xf32> to vector<64x32xf32>
    %5 = arith.mulf %0, %4 : vector<64x32xf32>
    %6 = vector.broadcast %3 : vector<1x32xf32> to vector<64x32xf32>
    %7 = arith.mulf %1, %6 : vector<64x32xf32>
    %8 = arith.addf %5, %7 : vector<64x32xf32>
    %cst = arith.constant dense<0.000000e+00> : vector<64xf32>
    %9 = vector.multi_reduction <add>, %8, %cst [1] : vector<64x32xf32> to vector<64xf32>
    %10 = vector.shape_cast %9 : vector<64xf32> to vector<64x1xf32>
    %c0_6 = arith.constant 0 : index
    %11 = memref.load %arg1[%c0_6] : memref<1xf32, #tpu.memory_space<smem>>
    %12 = vector.broadcast %11 : f32 to vector<64x1xf32>
    %13 = arith.addf %10, %12 : vector<64x1xf32>
    %cst_7 = arith.constant 0.000000e+00 : f32
    %14 = vector.broadcast %cst_7 : f32 to vector<64x1xf32>
    %15 = arith.maximumf %13, %14 : vector<64x1xf32>
    %c0_8 = arith.constant 0 : index
    %c0_9 = arith.constant 0 : index
    %16 = vector.load %arg5[%c0_8, %c0_9] : memref<32x8xf32, #tpu.memory_space<vmem>>, vector<32x8xf32>
    %cst_10 = arith.constant dense<0.000000e+00> : vector<64x8xf32>
    %17 = tpu.matmul %1, %16, %cst_10 {dimension_numbers = #tpu.dot_dimension_numbers<[1], [0], [0], [1], [0, 0, 1, 1], [], []>} : vector<64x32xf32>, vector<32x8xf32>, vector<64x8xf32> -> vector<64x8xf32>
    %c0_11 = arith.constant 0 : index
    %c0_12 = arith.constant 0 : index
    %18 = vector.load %arg6[%c0_11, %c0_12] : memref<1x8xf32, #tpu.memory_space<vmem>>, vector<1x8xf32>
    %19 = vector.broadcast %18 : vector<1x8xf32> to vector<64x8xf32>
    %20 = arith.addf %17, %19 : vector<64x8xf32>
    %21 = vector.broadcast %15 : vector<64x1xf32> to vector<64x8xf32>
    %22 = arith.mulf %21, %20 : vector<64x8xf32>
    %c0_13 = arith.constant 0 : index
    %c0_14 = arith.constant 0 : index
    %23 = vector.load %arg7[%c0_13, %c0_14] : memref<64x8xf32, #tpu.memory_space<vmem>>, vector<64x8xf32>
    tpu.vector_store %arg7[%c0_13, %c0_14], %22 {strides = array<i32>} : memref<64x8xf32, #tpu.memory_space<vmem>>, vector<64x8xf32>,
    return
  }
  func.func @transform_0(%arg0: i32) -> i32 {
    %c0_i32 = arith.constant 0 : i32
    %c0_i32_0 = arith.constant 0 : i32
    return %c0_i32 : i32
  }
  func.func @transform_1(%arg0: i32) -> (i32, i32) {
    %c0_i32 = arith.constant 0 : i32
    %c0_i32_0 = arith.constant 0 : i32
    return %arg0, %c0_i32 : i32, i32
  }
  func.func @transform_2(%arg0: i32) -> (i32, i32) {
    %c0_i32 = arith.constant 0 : i32
    %c0_i32_0 = arith.constant 0 : i32
    return %arg0, %c0_i32 : i32, i32
  }
  func.func @transform_3(%arg0: i32) -> (i32, i32) {
    %c0_i32 = arith.constant 0 : i32
    %c0_i32_0 = arith.constant 0 : i32
    %c0_i32_1 = arith.constant 0 : i32
    return %c0_i32, %c0_i32_0 : i32, i32
  }
  func.func @transform_4(%arg0: i32) -> (i32, i32) {
    %c0_i32 = arith.constant 0 : i32
    %c0_i32_0 = arith.constant 0 : i32
    %c0_i32_1 = arith.constant 0 : i32
    return %c0_i32, %c0_i32_0 : i32, i32
  }
  func.func @transform_5(%arg0: i32) -> (i32, i32) {
    %c0_i32 = arith.constant 0 : i32
    %c0_i32_0 = arith.constant 0 : i32
    %c0_i32_1 = arith.constant 0 : i32
    return %c0_i32, %c0_i32_0 : i32, i32
  }
  func.func @transform_6(%arg0: i32) -> (i32, i32) {
    %c0_i32 = arith.constant 0 : i32
    %c0_i32_0 = arith.constant 0 : i32
    return %arg0, %c0_i32 : i32, i32
  }
}

</mosaic_0001>

<bundles_post_ra>
// kernel: relation_between_pair.1
= control target key start
LH: loop header
LB: loop body
LE: loop exit
PB: predicated region body
PF: predicated region fallthrough
CT: control target
= control target key end

     0   :  { %vm74_vm0 = vcmask 261120   ;;  %vm265_vm1 = vcmask 64512   ;;  %s488_s4 = inlined_call_operand.vmem [shape: f32[32,8], index: 4, kind: input, shape index: {}]   ;;  %s489_s2 = inlined_call_operand.vmem [shape: f32[64,32], index: 2, kind: input, shape index: {}]   ;;  %s490_s3 = inlined_call_operand.vmem [shape: f32[2,32], index: 3, kind: input, shape index: {}]   ;;  %s491_s1 = inlined_call_operand.vmem [shape: f32[64,32], index: 1, kind: input, shape index: {}]   ;;  %s492_s0 = inlined_call_operand.<no memory space> [shape: f32[1], index: 0, kind: input, shape index: {}]   ;;  %s493_s5 = inlined_call_operand.vmem [shape: f32[1,8], index: 5, kind: input, shape index: {}]   ;;  %s494_s6 = inlined_call_operand.vmem [shape: f32[64,8], index: 6, kind: output, shape index: {}]  }
   0x1   :  { %v117_v0 = vld [vmem:[%s488_s4] sm:$0xff]  ;;  %v118_v1 = vld [vmem:[%s488_s4 + $0x8] sm:$0xff]  ;;  %v119_v2 = vld [vmem:[%s488_s4 + $0x10] sm:$0xff]  ;;  %v100_v62 = vstv %s492_s0 }
   0x2   :  { %v321_v3 = vpack.c.bf16 %v118_v1, %v117_v0  ;;  %v120_v4 = vld [vmem:[%s488_s4 + $0x18] sm:$0xff]  ;;  %v32_v5 = vld [vmem:[%s489_s2] sm:$0xff]  ;;  %v34_v10 = vld [vmem:[%s489_s2 + $0x10] sm:$0xff] }
   0x3   :  { %v325_v6 = vpack.c.bf16 %v120_v4, %v119_v2  ;;  %v278_v7 = vld [vmem:[%s490_s3] ss:$0 sm:$0xff]  ;;  %v279_v8 = vld [vmem:[%s490_s3 + $0x1] ss:$0 sm:$0xff]  ;;  %309 = vmatprep.mubr.msk.f32.mxu0 %vm74_vm0, %v32_v5  ;;  %v33_v12 = vld [vmem:[%s489_s2 + $0x8] sm:$0xff] }
   0x4   :  { %322 = vmatprep.subr.bf16.mxu0 %v321_v3  ;;  %329 = vmatprep.subr.bf16.mxu1 %v321_v3  ;;  %v36_v9 = vld [vmem:[%s489_s2 + $0x20] sm:$0xff]  ;;  %v58_v11 = vmul.f32 %v279_v8, %v32_v5  ;;  %v35_v13 = vld [vmem:[%s489_s2 + $0x18] sm:$0xff]  ;;  %v26_v14 = vld [vmem:[%s491_s1 + $0x10] sm:$0xff]  ;;  %v60_v15 = vmul.f32 %v279_v8, %v34_v10  ;;  %v59_v25 = vmul.f32 %v279_v8, %v33_v12 }
   0x5   :  { %324 = vmatpush3.bf16.msra.mxu0 %v321_v3  ;;  %331 = vmatpush3.bf16.msra.mxu1 %v321_v3  ;;  %v48_v16 = vmul.f32 %v278_v7, %v26_v14  ;;  %v24_v17 = vld [vmem:[%s491_s1] sm:$0xff]  ;;  %v27_v18 = vld [vmem:[%s491_s1 + $0x18] sm:$0xff]  ;;  %v61_v19 = vmul.f32 %v279_v8, %v35_v13  ;;  %v25_v20 = vld [vmem:[%s491_s1 + $0x8] sm:$0xff]  ;;  %v62_v36 = vmul.f32 %v279_v8, %v36_v9 }
   0x6   :  { %326 = vmatprep.subr.bf16.mxu0 %v325_v6  ;;  %330 = vmatprep.subr.bf16.mxu1 %v325_v6  ;;  %v37_v21 = vld [vmem:[%s489_s2 + $0x28] sm:$0xff]  ;;  %v46_v22 = vmul.f32 %v278_v7, %v24_v17  ;;  %v49_v23 = vmul.f32 %v278_v7, %v27_v18  ;;  %v47_v24 = vmul.f32 %v278_v7, %v25_v20  ;;  %v28_v30 = vld [vmem:[%s491_s1 + $0x20] sm:$0xff]  ;;  %v31_v33 = vld [vmem:[%s491_s1 + $0x38] sm:$0xff] }
   0x7   :  { %315 = vmatprep.mubr.msk.f32.mxu1 %vm74_vm0, %v36_v9  ;;  %v29_v26 = vld [vmem:[%s491_s1 + $0x28] sm:$0xff]  ;;  %v68_v27 = vadd.f32 %v60_v15, %v48_v16  ;;  %v63_v29 = vmul.f32 %v279_v8, %v37_v21  ;;  %v38_v34 = vld [vmem:[%s489_s2 + $0x30] sm:$0xff]  ;;  %v39_v37 = vld [vmem:[%s489_s2 + $0x38] sm:$0xff]  ;;  %v50_v40 = vmul.f32 %v278_v7, %v28_v30  ;;  %v53_v43 = vmul.f32 %v278_v7, %v31_v33 }
   0x8   :  { %v51_v28 = vmul.f32 %v278_v7, %v29_v26  ;;  %v66_v31 = vadd.f32 %v58_v11, %v46_v22  ;;  %v69_v32 = vadd.f32 %v61_v19, %v49_v23  ;;  %v67_v39 = vadd.f32 %v59_v25, %v47_v24  ;;  %v30_v45 = vld [vmem:[%s491_s1 + $0x30] sm:$0xff]  ;;  %v280_v5 = vld [vmem:[%s493_s5] ss:$0 sm:$0xff] }
   0x9   :  { %328 = vmatpush3.bf16.msra.mxu0 %v325_v6  ;;  %332 = vmatpush3.bf16.msra.mxu1 %v325_v6  ;;  %v81_v35 = vsel %vm74_vm0, %v68_v27, 0.0  ;;  %v65_v44 = vmul.f32 %v279_v8, %v39_v37  ;;  %v70_v47 = vadd.f32 %v62_v36, %v50_v40  ;;  %v52_v48 = vmul.f32 %v278_v7, %v30_v45 }
   0xa   :  { %82 = vadd.xlane.f32.xlu1 %v81_v35  ;;  %v75_v38 = vsel %vm74_vm0, %v66_v31, 0.0  ;;  %v84_v41 = vsel %vm74_vm0, %v69_v32, 0.0  ;;  %v71_v42 = vadd.f32 %v63_v29, %v51_v28  ;;  %v78_v46 = vsel %vm74_vm0, %v67_v39, 0.0 }
   0xb   :  { %76 = vadd.xlane.f32.xlu0 %v75_v38  ;;  %v64_v49 = vmul.f32 %v279_v8, %v38_v34  ;;  %v73_v51 = vadd.f32 %v65_v44, %v53_v43  ;;  %v87_v52 = vsel %vm74_vm0, %v70_v47, 0.0 }
   0xc   :  { %310 = vmatmul.mubr.msk.f32.vlgmr.msra.gmra.mrb[0].mxu0 %vm74_vm0, %v33_v12  ;;  %316 = vmatmul.mubr.msk.f32.vlgmr.msra.gmra.mrb[0].mxu1 %vm74_vm0, %v37_v21  ;;  %v90_v50 = vsel %vm74_vm0, %v71_v42, 0.0 }
   0xd   :  { %312 = vmatprep.mubr.msk.f32.mxu0 %vm74_vm0, %v34_v10  ;;  %318 = vmatprep.mubr.msk.f32.mxu1 %vm74_vm0, %v38_v34  ;;  %v72_v53 = vadd.f32 %v64_v49, %v52_v48  ;;  %v96_v54 = vsel %vm74_vm0, %v73_v51, 0.0 }
   0xe   :  { %85 = vadd.xlane.f32.xlu1 %v84_v41 }
   0xf   :  { %79 = vadd.xlane.f32.xlu0 %v78_v46  ;;  %v93_v55 = vsel %vm74_vm0, %v72_v53, 0.0 }
  0x10   :  { %313 = vmatmul.mubr.msk.f32.gmra.mrb[2].mxu0 %vm74_vm0, %v35_v13  ;;  %319 = vmatmul.mubr.msk.f32.gmra.mrb[2].mxu1 %vm74_vm0, %v39_v37 }
  0x12   :  { %91 = vadd.xlane.f32.xlu1 %v90_v50 }
  0x13   :  { %88 = vadd.xlane.f32.xlu0 %v87_v52 }
  0x16   :  { %97 = vadd.xlane.f32.xlu1 %v96_v54 }
  0x17   :  { %94 = vadd.xlane.f32.xlu0 %v93_v55 }
  0x97   :  { %v83_v56 = vpop.xlane.xlu1 %82 }
  0x98   :  { %v77_v57 = vpop.xlane.xlu0 %76  ;;  %v103_v18 = vadd.f32 %v100_v62, %v83_v56 }
  0x99   :  { %v101_v4 = vadd.f32 %v100_v62, %v77_v57 }
  0x9a   :  { %v111_v35 = vmax.f32 %v103_v18, 0.0 }
  0x9b   :  { %v86_v58 = vpop.xlane.xlu1 %85  ;;  %v109_v19 = vmax.f32 %v101_v4, 0.0 }
  0x9c   :  { %v80_v59 = vpop.xlane.xlu0 %79  ;;  %v104_v12 = vadd.f32 %v100_v62, %v86_v58 }
  0x9d   :  { %v102_v2 = vadd.f32 %v100_v62, %v80_v59 }
  0x9e   :  { %v112_v30 = vmax.f32 %v104_v12, 0.0 }
  0x9f   :  { %v92_v60 = vpop.xlane.xlu1 %91  ;;  %v110_v13 = vmax.f32 %v102_v2, 0.0 }
  0xa0   :  { %v89_v61 = vpop.xlane.xlu0 %88  ;;  %v106_v63 = vadd.f32 %v100_v62, %v92_v60 }
  0xa1   :  { %v105_v0 = vadd.f32 %v100_v62, %v89_v61 }
  0xa2   :  { %v114_v6 = vmax.f32 %v106_v63, 0.0 }
  0xa3   :  { %v98_v1 = vpop.xlane.xlu1 %97  ;;  %v113_v8 = vmax.f32 %v105_v0, 0.0 }
  0xa4   :  { %v95_v3 = vpop.xlane.xlu0 %94  ;;  %v108_v7 = vadd.f32 %v100_v62, %v98_v1 }
  0xa5   :  { %v107_v11 = vadd.f32 %v100_v62, %v95_v3 }
  0xa6   :  { %v116_v24 = vmax.f32 %v108_v7, 0.0 }
  0xa7   :  { %v115_v27 = vmax.f32 %v107_v11, 0.0 }
  0xdf   :  { %v311_v9 = vpop.f32.mrb[0].mxu0  ;;  %v317_v10 = vpop.f32.mrb[0].mxu1 }
  0xe0   :  { %v224_v14 = vadd.f32 %v311_v9, %v280_v5  ;;  %v244_v15 = vadd.f32 %v317_v10, %v280_v5  ;;  %v218_v16 = vpop.f32.mrb[1].mxu0  ;;  %v238_v17 = vpop.f32.mrb[1].mxu1 }
  0xe1   :  { %v219_v20 = vadd.f32 %v280_v5, %v218_v16  ;;  %v239_v21 = vadd.f32 %v280_v5, %v238_v17 }
  0xe2   :  { %v258_v22 = vmul.f32 %v224_v14, %v110_v13  ;;  %v262_v23 = vmul.f32 %v244_v15, %v114_v6 }
  0xe3   :  { %v257_v25 = vmul.f32 %v219_v20, %v109_v19  ;;  %v261_v26 = vmul.f32 %v239_v21, %v113_v8  ;;  %v314_v28 = vpop.f32.mrb[2].mxu0  ;;  %v320_v29 = vpop.f32.mrb[2].mxu1 }
  0xe4   :  { %267 = vst.msk [vmem:[%s494_s6 + $0x8] sm:$0xff] %vm265_vm1, %v258_v22  ;;  %271 = vst.msk [vmem:[%s494_s6 + $0x28] sm:$0xff] %vm265_vm1, %v262_v23  ;;  %v234_v31 = vadd.f32 %v314_v28, %v280_v5  ;;  %v254_v32 = vadd.f32 %v320_v29, %v280_v5  ;;  %v228_v33 = vpop.f32.mrb[3].mxu0  ;;  %v248_v34 = vpop.f32.mrb[3].mxu1 }
  0xe5   :  { %266 = vst.msk [vmem:[%s494_s6] sm:$0xff] %vm265_vm1, %v257_v25  ;;  %270 = vst.msk [vmem:[%s494_s6 + $0x20] sm:$0xff] %vm265_vm1, %v261_v26  ;;  %v229_v36 = vadd.f32 %v280_v5, %v228_v33  ;;  %v249_v37 = vadd.f32 %v280_v5, %v248_v34 }
  0xe6   :  { %v260_v38 = vmul.f32 %v234_v31, %v112_v30  ;;  %v264_v39 = vmul.f32 %v254_v32, %v116_v24 }
  0xe7   :  { %v259_v40 = vmul.f32 %v229_v36, %v111_v35  ;;  %v263_v41 = vmul.f32 %v249_v37, %v115_v27 }
  0xe8   :  { %269 = vst.msk [vmem:[%s494_s6 + $0x18] sm:$0xff] %vm265_vm1, %v260_v38  ;;  %273 = vst.msk [vmem:[%s494_s6 + $0x38] sm:$0xff] %vm265_vm1, %v264_v39 }
  0xe9   :  { %268 = vst.msk [vmem:[%s494_s6 + $0x10] sm:$0xff] %vm265_vm1, %v259_v40  ;;  %272 = vst.msk [vmem:[%s494_s6 + $0x30] sm:$0xff] %vm265_vm1, %v263_v41 }

</bundles_post_ra>
